<compile_context>
chip_gen: v7x
topology: tpu7x:2x2x1
jax: 0.10.0
libtpu: 0.0.40
codegen_flags: <defaults>
</compile_context>

<pallas_src>
import jax
import jax.numpy as jnp
import numpy as np
from jax.experimental import pallas as pl
from jax.experimental.pallas import tpu as pltpu


def _round_up(x, m):
    return ((x + m - 1) // m) * m


# ---------------------------------------------------------------------------
# Pallas kernel: wide (VPU) + deep MLP (MXU, fused multi-hot gather) + logsumexp
# Everything is laid out batch-on-lanes: activations are [features, tile_b].
# ---------------------------------------------------------------------------
def _make_wide_deep_kernel(num_sparse, num_layers):
    """num_layers = total number of MLP Linear layers (>= 1)."""

    def kernel(*refs):
        (xin_ref, idx_ref, wide_w_ref, wide_b_ref, w1_ref, b1_ref) = refs[:6]
        off = 6
        proj_ref = None
        if num_sparse > 0:
            proj_ref = refs[off]
            off += 1
        layer_refs = refs[off: off + 2 * (num_layers - 1)]
        out_ref = refs[-1]

        x = xin_ref[...]                                   # [Dw+Dd, tile_b] f32
        tile_b = x.shape[1]

        # ---- wide part: VPU multiply + sublane reduce (f32) ----------------
        # wide_w is zero over the deep-only rows, so the merged input slab can
        # be used directly.
        wide_part = (jnp.sum(x * wide_w_ref[...], axis=0, keepdims=True)
                     + wide_b_ref[...])                    # [1, tile_b]

        # ---- deep layer 1: dense slice (W1 zero over wide rows) ------------
        h = jnp.dot(w1_ref[...], x.astype(jnp.bfloat16),
                    preferred_element_type=jnp.float32)    # [H1, tile_b]

        # ---- fused embedding gather: one iota, one multi-hot, one matmul ---
        if num_sparse > 0:
            proj = proj_ref[...]                           # [H1, total_vocab] bf16
            idx = idx_ref[...]                             # [S, tile_b] i32 (offsets baked in)
            total_vocab = proj.shape[1]
            iota = jax.lax.broadcasted_iota(
                jnp.int32, (total_vocab, tile_b), 0)       # hoisted, built once
            hot = iota == idx[0:1, :]
            for s in range(1, num_sparse):
                hot = jnp.logical_or(hot, iota == idx[s:s + 1, :])
            h = h + jnp.dot(proj, hot.astype(proj.dtype),
                            preferred_element_type=jnp.float32)
        h = jnp.maximum(h + b1_ref[...], 0.0)              # ReLU, f32

        # ---- remaining MLP layers: Linear + ReLU ---------------------------
        for l in range(num_layers - 1):
            w = layer_refs[2 * l][...]                     # [out, in] bf16
            b = layer_refs[2 * l + 1][...]                 # [out, 1]  f32
            h = jnp.dot(w, h.astype(w.dtype),
                        preferred_element_type=jnp.float32) + b
            h = jnp.maximum(h, 0.0)

        # ---- logsumexp over concat([wide, deep]) without a concat ----------
        m = jnp.maximum(jnp.max(h, axis=0, keepdims=True), wide_part)
        total = (jnp.exp(wide_part - m)
                 + jnp.sum(jnp.exp(h - m), axis=0, keepdims=True))
        lse = m + jnp.log(total)                           # [1, tile_b] lane-dense
        out_ref[...] = lse.reshape(1, 1, tile_b)

    return kernel


# ---------------------------------------------------------------------------
# Wrapper: batch-on-lanes tiling; embedding projection folded into params
# ---------------------------------------------------------------------------
def wide_deep_lse(params, x_wide_dense, x_deep_dense, x_deep_sparse,
                  *, tile_b=4096):
    """Fused wide + deep + logsumexp (everything up to torch.poisson)."""
    B, Dw = x_wide_dense.shape
    Dd = x_deep_dense.shape[1]
    S = int(x_deep_sparse.shape[1])
    mlp = params["mlp"]
    num_layers = len(mlp)
    w1, b1 = mlp[0]
    H1 = w1.shape[1]
    D_in = Dw + Dd

    # ---- batch tiling: batch is the lane axis, so tile_b must be a multiple
    # of 128.  Keep >= 2 grid steps when the batch allows so v7x's two
    # TensorCores both get work (harmless on single-TC v5e/v6e).
    tile_b = max(128, _round_up(int(tile_b), 128))
    if B > 128:
        tile_b = min(tile_b, _round_up(-(-B // 2), 128))
    B_pad = _round_up(B, tile_b)
    num_tiles = B_pad // tile_b

    # ---- merged, transposed streamed input: [Dw+Dd, B_pad] f32 -------------
    xin = jnp.concatenate(
        [x_wide_dense.astype(jnp.float32),
         x_deep_dense.astype(jnp.float32)], axis=1).T
    if B_pad > B:                       # pad only when strictly necessary
        xin = jnp.pad(xin, ((0, 0), (0, B_pad - B)))

    # ---- sparse indices: cumulative vocab offsets baked in, [S, B_pad] -----
    if S > 0:
        vocab_sizes = [int(params["emb"][s].shape[0]) for s in range(S)]
        offsets = np.concatenate([[0], np.cumsum(vocab_sizes)[:-1]]
                                 ).astype(np.int32)
        idx_t = (x_deep_sparse.astype(jnp.int32)
                 + jnp.asarray(offsets)[None, :]).T        # [S, B]
        if B_pad > B:
            idx_t = jnp.pad(idx_t, ((0, 0), (0, B_pad - B)))
    else:
        idx_t = jnp.zeros((1, B_pad), jnp.int32)

    # ---- weights, transposed to [out, in] for batch-on-lanes ----------------
    wide_w_col = jnp.concatenate(
        [params["wide_w"].astype(jnp.float32),
         jnp.zeros((Dd, 1), jnp.float32)], axis=0)         # [Dw+Dd, 1]
    wide_b = params["wide_b"].astype(jnp.float32).reshape(1, 1)

    w1_full = jnp.concatenate(
        [jnp.zeros((Dw, H1), w1.dtype), w1[:Dd]],
        axis=0).T.astype(jnp.bfloat16)                     # [H1, Dw+Dd]
    b1_col = b1.astype(jnp.float32).reshape(H1, 1)

    proj = None
    total_vocab = 0
    if S > 0:
        k = params["emb"][0].shape[1]
        proj_parts = []
        for s in range(S):
            w_slice = w1[Dd + s * k: Dd + (s + 1) * k]     # [k, H1]
            proj_parts.append((params["emb"][s] @ w_slice).T)   # [H1, vocab_s]
        proj = jnp.concatenate(proj_parts, axis=1).astype(jnp.bfloat16)
        total_vocab = proj.shape[1]

    rest = []
    for w, b in mlp[1:]:
        rest.append(w.T.astype(jnp.bfloat16))              # [out, in]
        rest.append(b.astype(jnp.float32).reshape(-1, 1))  # [out, 1]

    streamed = lambda nrows: pl.BlockSpec((nrows, tile_b), lambda i: (0, i))
    resident = lambda arr: pl.BlockSpec(arr.shape, lambda i: (0, 0))

    inputs = [xin, idx_t, wide_w_col, wide_b, w1_full, b1_col]
    in_specs = [streamed(D_in), streamed(idx_t.shape[0]),
                resident(wide_w_col), resident(wide_b),
                resident(w1_full), resident(b1_col)]
    if S > 0:
        inputs.append(proj)
        in_specs.append(resident(proj))
    inputs += rest
    in_specs += [resident(a) for a in rest]

    # Advisory cost estimate so XLA schedules surrounding ops around the call.
    flops_per_row = 2 * D_in + 2 * D_in * H1 + 2 * total_vocab * H1
    for w, _ in mlp[1:]:
        flops_per_row += 2 * w.shape[0] * w.shape[1]
    h_last = mlp[-1][0].shape[1]
    weight_bytes = sum(int(a.size) * a.dtype.itemsize for a in inputs[2:])
    streamed_bytes = (int(xin.size) + int(idx_t.size) + B_pad) * 4
    cost = pl.CostEstimate(
        flops=int(flops_per_row) * int(B_pad),
        transcendentals=int(B_pad) * (h_last + 2),
        bytes_accessed=int(streamed_bytes + weight_bytes),
    )

    kernel = _make_wide_deep_kernel(S, num_layers)

    out = pl.pallas_call(
        kernel,
        out_shape=jax.ShapeDtypeStruct((num_tiles, 1, tile_b), jnp.float32),
        grid=(num_tiles,),
        in_specs=in_specs,
        out_specs=pl.BlockSpec((1, 1, tile_b), lambda i: (i, 0, 0)),
        compiler_params=pltpu.CompilerParams(
            dimension_semantics=("parallel",),
            vmem_limit_bytes=48 * 1024 * 1024,   # safe on v7x (64 MiB physical)
        ),
        cost_estimate=cost,
    )(*inputs)

    return out.reshape(B_pad)[:B].reshape(B, 1)


def wide_deep_forward(params, x_wide_dense, x_deep_dense, x_deep_sparse,
                      poisson_key, *, tile_b=4096):
    lse = wide_deep_lse(params, x_wide_dense, x_deep_dense, x_deep_sparse,
                        tile_b=tile_b)
    # TODO(synk): torch.poisson (stochastic sampling) has no in-kernel Pallas
    # equivalent; done with jax.random.poisson in glue.  As in the PyTorch
    # reference, the rate is the raw logsumexp (> 0 since the deep part is
    # ReLU'd, so logsumexp > log(1) = 0).
    pred = jax.random.poisson(poisson_key, lse).astype(jnp.float32)
    return pred


# ---------------------------------------------------------------------------
# Pure-JAX f32 reference of the deterministic part (for verification)
# ---------------------------------------------------------------------------
def _reference_lse(params, x_wide_dense, x_deep_dense, x_deep_sparse):
    if x_deep_sparse.shape[1] > 0:
        embeds = [params["emb"][i][x_deep_sparse[:, i]]
                  for i in range(x_deep_sparse.shape[1])]
        deep_in = jnp.concatenate([x_deep_dense] + embeds, axis=-1)
    else:
        deep_in = x_deep_dense
    h = deep_in
    for w, b in params["mlp"]:
        h = jnp.maximum(h @ w + b, 0.0)
    wide = x_wide_dense @ params["wide_w"] + params["wide_b"]
    cat = jnp.concatenate([wide, h], axis=-1)
    m = jnp.max(cat, axis=1, keepdims=True)
    return m + jnp.log(jnp.sum(jnp.exp(cat - m), axis=1, keepdims=True))


# ---------------------------------------------------------------------------
# Deterministic parameter construction (shapes follow the module __init__)
# ---------------------------------------------------------------------------
def init_params(key, wide_dense_fea_num, deep_dense_fea_num, sparse_fea_dict,
                k, hidden_layer_list):
    keys = jax.random.split(
        key, 3 + len(sparse_fea_dict) + len(hidden_layer_list))
    ki = iter(keys)

    # Embedding tables: N(0, 1) like nn.Embedding default
    emb = [jax.random.normal(next(ki), (n, k), dtype=jnp.float32)
           for n in sparse_fea_dict]

    # Wide: Linear(wide_dense_fea_num, 1), xavier-normal-ish (gain 0.01)
    kw = next(ki)
    wide_w = (0.01 * jnp.sqrt(2.0 / (wide_dense_fea_num + 1))
              * jax.random.normal(kw, (wide_dense_fea_num, 1),
                                  dtype=jnp.float32))
    wide_b = jnp.zeros((1, 1), dtype=jnp.float32)

    # Deep MLP: layer sizes [sparse*k + dense] + hidden_layer_list
    layer_list = ([len(sparse_fea_dict) * k + deep_dense_fea_num]
                  + list(hidden_layer_list))
    mlp = []
    for fan_in, fan_out in zip(layer_list[:-1], layer_list[1:]):
        km = next(ki)
        w = (jnp.sqrt(2.0 / (fan_in + fan_out))
             * jax.random.normal(km, (fan_in, fan_out), dtype=jnp.float32))
        b = jnp.zeros((1, fan_out), dtype=jnp.float32)
        mlp.append((w, b))

    return {"emb": emb, "wide_w": wide_w, "wide_b": wide_b, "mlp": mlp}


# ---------------------------------------------------------------------------
if __name__ == "__main__":
    B = 300                            # exercises multi-tile + padded last tile
    wide_dense_fea_num = 4
    deep_dense_fea_num = 4
    sparse_fea_dict = [10, 20, 30]     # vocab size of each sparse feature
    k = 8                              # embedding dim
    hidden_layer_list = [32, 16]

    key = jax.random.PRNGKey(0)
    k_param, k_wide, k_dense, k_sparse, k_poisson = jax.random.split(key, 5)

    params = init_params(k_param, wide_dense_fea_num, deep_dense_fea_num,
                         sparse_fea_dict, k, hidden_layer_list)

    x_wide_dense = jax.random.normal(k_wide, (B, wide_dense_fea_num),
                                     dtype=jnp.float32)
    x_deep_dense = jax.random.normal(k_dense, (B, deep_dense_fea_num),
                                     dtype=jnp.float32)
    x_deep_sparse = jnp.stack(
        [jax.random.randint(jax.random.fold_in(k_sparse, i), (B,), 0, n)
         for i, n in enumerate(sparse_fea_dict)], axis=1).astype(jnp.int32)

    # Small tile (128 = one lane width) so the batch grid / padding /
    # resident-weight path is exercised (3 grid steps); production would use
    # the default tile_b=4096.
    lse = wide_deep_lse(params, x_wide_dense, x_deep_dense, x_deep_sparse,
                        tile_b=128)
    jax.block_until_ready(lse)

    ref = _reference_lse(params, x_wide_dense, x_deep_dense, x_deep_sparse)
    np.testing.assert_allclose(np.asarray(lse), np.asarray(ref),
                               rtol=5e-2, atol=1e-1)

    pred = wide_deep_forward(params, x_wide_dense, x_deep_dense,
                             x_deep_sparse, k_poisson, tile_b=128)
    jax.block_until_ready(pred)
    assert pred.shape == (B, 1)
    print("KERNEL_OK")
</pallas_src>

<mosaic_0001>
module attributes {stable_mosaic.version = 11 : i64} {
  func.func @kernel(%arg0: i32, %arg1: memref<8x128xf32, #tpu.memory_space<vmem>>, %arg2: memref<3x128xi32, #tpu.memory_space<vmem>>, %arg3: memref<8x1xf32, #tpu.memory_space<vmem>>, %arg4: memref<1x1xf32, #tpu.memory_space<vmem>>, %arg5: memref<32x8xbf16, #tpu.memory_space<vmem>>, %arg6: memref<32x1xf32, #tpu.memory_space<vmem>>, %arg7: memref<32x60xbf16, #tpu.memory_space<vmem>>, %arg8: memref<16x32xbf16, #tpu.memory_space<vmem>>, %arg9: memref<16x1xf32, #tpu.memory_space<vmem>>, %arg10: memref<1x1x128xf32, #tpu.memory_space<vmem>>) attributes {dimension_semantics = [#tpu.dimension_semantics<parallel>], iteration_bounds = array<i64: 3>, scalar_prefetch = 0 : i64, scratch_operands = 0 : i64, tpu.core_type = #tpu.core_type<tc>, window_params = [{transform_indices = @transform_0, window_bounds = array<i64: 8, 128>}, {transform_indices = @transform_1, window_bounds = array<i64: 3, 128>}, {pipeline_mode = #tpu.pipeline_mode<synchronous>, transform_indices = @transform_2, window_bounds = array<i64: 8, 1>}, {pipeline_mode = #tpu.pipeline_mode<synchronous>, transform_indices = @transform_3, window_bounds = array<i64: 1, 1>}, {pipeline_mode = #tpu.pipeline_mode<synchronous>, transform_indices = @transform_4, window_bounds = array<i64: 32, 8>}, {pipeline_mode = #tpu.pipeline_mode<synchronous>, transform_indices = @transform_5, window_bounds = array<i64: 32, 1>}, {pipeline_mode = #tpu.pipeline_mode<synchronous>, transform_indices = @transform_6, window_bounds = array<i64: 32, 60>}, {pipeline_mode = #tpu.pipeline_mode<synchronous>, transform_indices = @transform_7, window_bounds = array<i64: 16, 32>}, {pipeline_mode = #tpu.pipeline_mode<synchronous>, transform_indices = @transform_8, window_bounds = array<i64: 16, 1>}, {transform_indices = @transform_9, window_bounds = array<i64: 1, 1, 128>}]} {
    %c0 = arith.constant 0 : index
    %c0_0 = arith.constant 0 : index
    %0 = vector.load %arg1[%c0, %c0_0] : memref<8x128xf32, #tpu.memory_space<vmem>>, vector<8x128xf32>
    %c0_1 = arith.constant 0 : index
    %c0_2 = arith.constant 0 : index
    %1 = vector.load %arg3[%c0_1, %c0_2] : memref<8x1xf32, #tpu.memory_space<vmem>>, vector<8x1xf32>
    %2 = vector.broadcast %1 : vector<8x1xf32> to vector<8x128xf32>
    %3 = arith.mulf %0, %2 : vector<8x128xf32>
    %cst = arith.constant dense<0.000000e+00> : vector<128xf32>
    %4 = vector.multi_reduction <add>, %3, %cst [0] : vector<8x128xf32> to vector<128xf32>
    %5 = vector.shape_cast %4 : vector<128xf32> to vector<1x128xf32>
    %c0_3 = arith.constant 0 : index
    %c0_4 = arith.constant 0 : index
    %6 = vector.load %arg4[%c0_3, %c0_4] : memref<1x1xf32, #tpu.memory_space<vmem>>, vector<1x1xf32>
    %7 = vector.broadcast %6 : vector<1x1xf32> to vector<1x128xf32>
    %8 = arith.addf %5, %7 : vector<1x128xf32>
    %c0_5 = arith.constant 0 : index
    %c0_6 = arith.constant 0 : index
    %9 = vector.load %arg5[%c0_5, %c0_6] : memref<32x8xbf16, #tpu.memory_space<vmem>>, vector<32x8xbf16>
    %10 = arith.truncf %0 : vector<8x128xf32> to vector<8x128xbf16>
    %cst_7 = arith.constant dense<0.000000e+00> : vector<32x128xf32>
    %11 = tpu.matmul %9, %10, %cst_7 {dimension_numbers = #tpu.dot_dimension_numbers<[1], [0], [0], [1], [0, 0, 1, 1], [], []>} : vector<32x8xbf16>, vector<8x128xbf16>, vector<32x128xf32> -> vector<32x128xf32>
    %c0_8 = arith.constant 0 : index
    %c0_9 = arith.constant 0 : index
    %12 = vector.load %arg7[%c0_8, %c0_9] : memref<32x60xbf16, #tpu.memory_space<vmem>>, vector<32x60xbf16>
    %c0_10 = arith.constant 0 : index
    %c0_11 = arith.constant 0 : index
    %13 = vector.load %arg2[%c0_10, %c0_11] : memref<3x128xi32, #tpu.memory_space<vmem>>, vector<3x128xi32>
    %14 = tpu.iota {dimensions = array<i32: 0>} : vector<60x128xi32>
    %15 = vector.extract_strided_slice %13 {offsets = [0, 0], sizes = [1, 128], strides = [1, 1]} : vector<3x128xi32> to vector<1x128xi32>
    %16 = vector.broadcast %15 : vector<1x128xi32> to vector<60x128xi32>
    %17 = arith.cmpi eq, %14, %16 : vector<60x128xi32>
    %18 = vector.extract_strided_slice %13 {offsets = [1, 0], sizes = [1, 128], strides = [1, 1]} : vector<3x128xi32> to vector<1x128xi32>
    %19 = vector.broadcast %18 : vector<1x128xi32> to vector<60x128xi32>
    %20 = arith.cmpi eq, %14, %19 : vector<60x128xi32>
    %21 = arith.ori %17, %20 : vector<60x128xi1>
    %22 = vector.extract_strided_slice %13 {offsets = [2, 0], sizes = [1, 128], strides = [1, 1]} : vector<3x128xi32> to vector<1x128xi32>
    %23 = vector.broadcast %22 : vector<1x128xi32> to vector<60x128xi32>
    %24 = arith.cmpi eq, %14, %23 : vector<60x128xi32>
    %25 = arith.ori %21, %24 : vector<60x128xi1>
    %26 = arith.extui %25 : vector<60x128xi1> to vector<60x128xi32>
    %27 = arith.sitofp %26 : vector<60x128xi32> to vector<60x128xf32>
    %28 = arith.truncf %27 : vector<60x128xf32> to vector<60x128xbf16>
    %cst_12 = arith.constant dense<0.000000e+00> : vector<32x128xf32>
    %29 = tpu.matmul %12, %28, %cst_12 {dimension_numbers = #tpu.dot_dimension_numbers<[1], [0], [0], [1], [0, 0, 1, 1], [], []>} : vector<32x60xbf16>, vector<60x128xbf16>, vector<32x128xf32> -> vector<32x128xf32>
    %30 = arith.addf %11, %29 : vector<32x128xf32>
    %c0_13 = arith.constant 0 : index
    %c0_14 = arith.constant 0 : index
    %31 = vector.load %arg6[%c0_13, %c0_14] : memref<32x1xf32, #tpu.memory_space<vmem>>, vector<32x1xf32>
    %32 = vector.broadcast %31 : vector<32x1xf32> to vector<32x128xf32>
    %33 = arith.addf %30, %32 : vector<32x128xf32>
    %cst_15 = arith.constant 0.000000e+00 : f32
    %34 = vector.broadcast %cst_15 : f32 to vector<32x128xf32>
    %35 = arith.maximumf %33, %34 : vector<32x128xf32>
    %c0_16 = arith.constant 0 : index
    %c0_17 = arith.constant 0 : index
    %36 = vector.load %arg8[%c0_16, %c0_17] : memref<16x32xbf16, #tpu.memory_space<vmem>>, vector<16x32xbf16>
    %c0_18 = arith.constant 0 : index
    %c0_19 = arith.constant 0 : index
    %37 = vector.load %arg9[%c0_18, %c0_19] : memref<16x1xf32, #tpu.memory_space<vmem>>, vector<16x1xf32>
    %38 = arith.truncf %35 : vector<32x128xf32> to vector<32x128xbf16>
    %cst_20 = arith.constant dense<0.000000e+00> : vector<16x128xf32>
    %39 = tpu.matmul %36, %38, %cst_20 {dimension_numbers = #tpu.dot_dimension_numbers<[1], [0], [0], [1], [0, 0, 1, 1], [], []>} : vector<16x32xbf16>, vector<32x128xbf16>, vector<16x128xf32> -> vector<16x128xf32>
    %40 = vector.broadcast %37 : vector<16x1xf32> to vector<16x128xf32>
    %41 = arith.addf %39, %40 : vector<16x128xf32>
    %cst_21 = arith.constant 0.000000e+00 : f32
    %42 = vector.broadcast %cst_21 : f32 to vector<16x128xf32>
    %43 = arith.maximumf %41, %42 : vector<16x128xf32>
    %cst_22 = arith.constant dense<0xFF800000> : vector<128xf32>
    %44 = vector.multi_reduction <maximumf>, %43, %cst_22 [0] : vector<16x128xf32> to vector<128xf32>
    %45 = vector.shape_cast %44 : vector<128xf32> to vector<1x128xf32>
    %46 = arith.maximumf %45, %8 : vector<1x128xf32>
    %47 = arith.subf %8, %46 : vector<1x128xf32>
    %48 = math.exp %47 : vector<1x128xf32>
    %49 = vector.broadcast %46 : vector<1x128xf32> to vector<16x128xf32>
    %50 = arith.subf %43, %49 : vector<16x128xf32>
    %51 = math.exp %50 : vector<16x128xf32>
    %cst_23 = arith.constant dense<0.000000e+00> : vector<128xf32>
    %52 = vector.multi_reduction <add>, %51, %cst_23 [0] : vector<16x128xf32> to vector<128xf32>
    %53 = vector.shape_cast %52 : vector<128xf32> to vector<1x128xf32>
    %54 = arith.addf %48, %53 : vector<1x128xf32>
    %55 = math.log %54 : vector<1x128xf32>
    %56 = arith.addf %46, %55 : vector<1x128xf32>
    %57 = vector.shape_cast %56 : vector<1x128xf32> to vector<1x1x128xf32>
    %c0_24 = arith.constant 0 : index
    %c0_25 = arith.constant 0 : index
    %c0_26 = arith.constant 0 : index
    %58 = vector.load %arg10[%c0_24, %c0_25, %c0_26] : memref<1x1x128xf32, #tpu.memory_space<vmem>>, vector<1x1x128xf32>
    tpu.vector_store %arg10[%c0_24, %c0_25, %c0_26], %57 {strides = array<i32>} : memref<1x1x128xf32, #tpu.memory_space<vmem>>, vector<1x1x128xf32>,
    return
  }
  func.func @transform_0(%arg0: i32) -> (i32, i32) {
    %c0_i32 = arith.constant 0 : i32
    %c0_i32_0 = arith.constant 0 : i32
    return %c0_i32, %arg0 : i32, i32
  }
  func.func @transform_1(%arg0: i32) -> (i32, i32) {
    %c0_i32 = arith.constant 0 : i32
    %c0_i32_0 = arith.constant 0 : i32
    return %c0_i32, %arg0 : i32, i32
  }
  func.func @transform_2(%arg0: i32) -> (i32, i32) {
    %c0_i32 = arith.constant 0 : i32
    %c0_i32_0 = arith.constant 0 : i32
    %c0_i32_1 = arith.constant 0 : i32
    return %c0_i32, %c0_i32_0 : i32, i32
  }
  func.func @transform_3(%arg0: i32) -> (i32, i32) {
    %c0_i32 = arith.constant 0 : i32
    %c0_i32_0 = arith.constant 0 : i32
    %c0_i32_1 = arith.constant 0 : i32
    return %c0_i32, %c0_i32_0 : i32, i32
  }
  func.func @transform_4(%arg0: i32) -> (i32, i32) {
    %c0_i32 = arith.constant 0 : i32
    %c0_i32_0 = arith.constant 0 : i32
    %c0_i32_1 = arith.constant 0 : i32
    return %c0_i32, %c0_i32_0 : i32, i32
  }
  func.func @transform_5(%arg0: i32) -> (i32, i32) {
    %c0_i32 = arith.constant 0 : i32
    %c0_i32_0 = arith.constant 0 : i32
    %c0_i32_1 = arith.constant 0 : i32
    return %c0_i32, %c0_i32_0 : i32, i32
  }
  func.func @transform_6(%arg0: i32) -> (i32, i32) {
    %c0_i32 = arith.constant 0 : i32
    %c0_i32_0 = arith.constant 0 : i32
    %c0_i32_1 = arith.constant 0 : i32
    return %c0_i32, %c0_i32_0 : i32, i32
  }
  func.func @transform_7(%arg0: i32) -> (i32, i32) {
    %c0_i32 = arith.constant 0 : i32
    %c0_i32_0 = arith.constant 0 : i32
    %c0_i32_1 = arith.constant 0 : i32
    return %c0_i32, %c0_i32_0 : i32, i32
  }
  func.func @transform_8(%arg0: i32) -> (i32, i32) {
    %c0_i32 = arith.constant 0 : i32
    %c0_i32_0 = arith.constant 0 : i32
    %c0_i32_1 = arith.constant 0 : i32
    return %c0_i32, %c0_i32_0 : i32, i32
  }
  func.func @transform_9(%arg0: i32) -> (i32, i32, i32) {
    %c0_i32 = arith.constant 0 : i32
    %c0_i32_0 = arith.constant 0 : i32
    %c0_i32_1 = arith.constant 0 : i32
    return %arg0, %c0_i32, %c0_i32_0 : i32, i32, i32
  }
}

</mosaic_0001>

<bundles_post_ra>
// kernel: tpu_custom_call.1
= control target key start
LH: loop header
LB: loop body
LE: loop exit
PB: predicated region body
PF: predicated region fallthrough
CT: control target
= control target key end

     0   :  { %s1301_s0 = inlined_call_operand.vmem [shape: f32[8,384], index: 0, kind: input, shape index: {}]   ;;  %s1302_s1 = inlined_call_operand.vmem [shape: s32[3,384], index: 1, kind: input, shape index: {}]   ;;  %s1303_s2 = inlined_call_operand.vmem [shape: f32[8,1], index: 2, kind: input, shape index: {}]   ;;  %s1304_s3 = inlined_call_operand.<no memory space> [shape: f32[1,1], index: 3, kind: input, shape index: {}]   ;;  %s1305_s4 = inlined_call_operand.vmem [shape: bf16[32,8], index: 4, kind: input, shape index: {}]   ;;  %s1306_s5 = inlined_call_operand.vmem [shape: f32[32,1], index: 5, kind: input, shape index: {}]   ;;  %s1307_s6 = inlined_call_operand.vmem [shape: bf16[32,60], index: 6, kind: input, shape index: {}]   ;;  %s1308_s7 = inlined_call_operand.vmem [shape: bf16[16,32], index: 7, kind: input, shape index: {}]   ;;  %s1309_s8 = inlined_call_operand.vmem [shape: f32[16,1], index: 8, kind: input, shape index: {}]   ;;  %s1310_s9 = inlined_call_operand.hbm [shape: f32[3,1,128], index: 9, kind: output, shape index: {}]  }
   0x1   :  { %v14_v0 = vstv %s1304_s3 }
   0x2   :  { %15 = vst [vmem:[#allocation2] sm:$0x1] %v14_v0 }
   0x3   :  { %16 = vsyncpa [#allocation4], 0 }
   0x4   :  { %18 = vsyncpa [#allocation4 + $0x1], 0  ;;  %s1069_s11 = smov 0   ;;  %s1071_s12 = smov 0  }
   0x5   :  { %s1073_s13 = smov 0   ;;  %s1075_s14 = smov 0  }
   0x6 LB: > { %s1090_s3 = sadd.s32 4294967295, %s1009_s14   ;;  %s812_s15 = sadd.s32 4294967294, %s1009_s14   ;;  %s1009_s14 = sphi %s1075_s14, %s1324_s14   ;;  %s1005_s13 = sphi %s1073_s13, %s1323_s13   ;;  %s1001_s12 = sphi %s1071_s12, %s1322_s12   ;;  %s997_s11 = sphi %s1069_s11, %s1321_s11  }
   0x7   : > { %s1094_s16 = sadd.s32 1, %s1009_s14   ;;  %s230_s17 = sadd.s32 1, %s1005_s13 }
   0x8   : > { %s227_s18 = ssub.s32 %s1009_s14, %s1094_s16  ;;  %p240_p0 = scmp.ne.s32.totalorder %s1005_s13, %s1001_s12 }
   0x9   : > { %p228_p1 = scmp.eq.s32.totalorder %s227_s18, 0  ;;  %p241_p2 = scmp.eq.s32.totalorder %s1090_s3, 2 }
   0xa   : > { %p246_p3 = scmp.ne.s32.totalorder %s1001_s12, %s997_s11  ;;  %p247_p4 = scmp.eq.s32.totalorder %s812_s15, 2 }
   0xb   : > { %s1105_s19 = scalar_select %p228_p1, %s1005_s13, %s230_s17  }
   0xc   : > { %p1107_p5 = por %p241_p2, %p240_p0  ;;  %p1111_p6 = por %p247_p4, %p246_p3 }
   0xd   : > { %p815_p7 = scmp.ge.s32.totalorder %s1009_s14, 1  ;;  %p300_p8 = scmp.lt.s32.totalorder %s1009_s14, 4 }
   0xf   : > { %p301_p9 = pnand %p815_p7, %p300_p8 }
  0x10   : > { %p338_p10 = scmp.lt.s32.totalorder (!%p301_p9), %s1090_s3, 2  ;;  %v367_v1 = vlaneseq (!%p301_p9)  ;;  %v934_v2 = vld [vmem:[%s1305_s4] sm:$0xff] (!%p301_p9)   ;;  %vm543_vm0 = vcmask (!%p301_p9), 64512   ;;  %vm1311_vm1 = vcmask (!%p301_p9), 490496   ;;  %vm550_vm2 = vcmask (!%p301_p9), 1043456   ;;  %v605_v19 = vld [vmem:[%s1306_s5 + $0x10] sm:$0xff] (!%p301_p9) }
  0x11   : > { %304 = sbr.rel (%p301_p9) target bundleno = 583 (0x247), region = 56  ;;  %871 = vmatprep.mubr.msk.bf16.mxu1 (!%p301_p9), %vm543_vm0, %v934_v2  ;;  %v936_v8 = vld [vmem:[%s1307_s6] sm:$0xff] (!%p301_p9)   ;;  %v1011_v18 = vmov (!%p301_p9), 0   ;;  %v604_v21 = vld [vmem:[%s1306_s5 + $0x8] sm:$0xff] (!%p301_p9)  ;;  %v606_v26 = vld [vmem:[%s1306_s5 + $0x18] sm:$0xff] (!%p301_p9)  ;;  %v1013_v32 = vmov (!%p301_p9), 0.0  }
  0x12   : > { %v1122_v3 = vshrl.u32 (!%p301_p9), %v367_v1, 7  ;;  %865 = vmatprep.mubr.msk.bf16.mxu0 (!%p301_p9), %vm1311_vm1, %v936_v8  ;;  %v603_v15 = vld [vmem:[%s1306_s5] sm:$0xff] (!%p301_p9)  ;;  %932 = vset.pattern.permute.xlu0 (!%p301_p9), %v1011_v18  ;;  %v935_v25 = vld [vmem:[%s1305_s4 + $0x8] sm:$0xff] (!%p301_p9)   ;;  %v1012_v28 = vmov (!%p301_p9), 1.0|1.0   ;;  %s842_s30 = sshll.u32 (!%p301_p9), %s1090_s3, 4 }
  0x13   : > { %933 = vset.pattern.permute.xlu1 (!%p301_p9), %v1011_v18  ;;  %609 = vperm.xlu0 (!%p301_p9), %932, %v603_v15   ;;  %v637_v29 = vld [vmem:[%s1309_s8] sm:$0xff] (!%p301_p9)  ;;  %v638_v31 = vld [vmem:[%s1309_s8 + $0x8] sm:$0xff] (!%p301_p9)  ;;  %s1259_s22 = scalar_lea.hbm (!%p301_p9), %s1310_s9, %s842_s30 }
  0x14   : > { %v369_v4 = vsub.s32 (!%p301_p9), 0, %v1122_v3  ;;  %v405_v5 = vsub.s32 (!%p301_p9), 1, %v1122_v3  ;;  %v425_v6 = vsub.s32 (!%p301_p9), 2, %v1122_v3  ;;  %v384_v7 = vadd.s32 (!%p301_p9), 8, %v1122_v3  ;;  %619 = vperm.xlu1 (!%p301_p9), %933, %v605_v19   ;;  %v348_v35 = vld [vmem:[%s1303_s2] sm:$0xff] (!%p301_p9)  ;;  %v937_v41 = vld [vmem:[%s1307_s6 + $0x8] sm:$0xff] (!%p301_p9)  }
  0x15   : > { %v385_v16 = vadd.s32 (!%p301_p9), 16, %v1122_v3  ;;  %v386_v17 = vadd.s32 (!%p301_p9), 24, %v1122_v3  ;;  %v387_v23 = vadd.s32 (!%p301_p9), 32, %v1122_v3  ;;  %v388_v27 = vadd.s32 (!%p301_p9), 40, %v1122_v3  ;;  %v361_v36 = vld [vmem:[#allocation2] sm:$0x1] (!%p301_p9) }
  0x16   : > { %v389_v33 = vadd.s32 (!%p301_p9), 48, %v1122_v3  ;;  %v390_v34 = vadd.s32 (!%p301_p9), 56, %v1122_v3 }
  0x17   : > { %614 = vperm.xlu0 (!%p301_p9), %932, %v604_v21  }
  0x18   : > { %s339_s24 = scalar_select %p338_p10, %s1090_s3, 2  ;;  %624 = vperm.xlu1 %933, %v606_v26  }
  0x19   : > { %s1015_s3 = smov [#allocation3]  }
  0x1a   : > { %s817_s25 = sshll.u32 %s339_s24, 2  ;;  %s816_s26 = sshll.u32 %s339_s24, 3 }
  0x1b   : > { %s345_s29 = scalar_lea.vmem %s1302_s1, %s817_s25  ;;  %s341_s15 = scalar_lea.vmem %s1301_s0, %s816_s26  ;;  %643 = vperm.xlu0 %932, %v637_v29  }
  0x1c   : > { %v381_v9 = vld [vmem:[%s345_s29] sm:$0x7]  ;;  %648 = vperm.xlu1 %933, %v638_v31   ;;  %s336_s29 = sand.u32 1, %s1001_s12   ;;  %s951_s25 = sshll.u32 %s1015_s3, 4  ;;  %s952_s25 = int_to_ptr.vmem [resolvable:$false] %s951_s25 }
  0x1d   : > { %v1138_v10 = vld [vmem:[%s341_s15] sm:$0xff]  ;;  %v1142_v11 = vrot.slane %v381_v9, %v369_v4  ;;  %v1144_v12 = vrot.slane %v381_v9, %v405_v5  ;;  %v1146_v13 = vrot.slane %v381_v9, %v425_v6  ;;  %s337_s10 = scalar_lea.vmem [#allocation3], %s336_s29  ;;  %s733_s23 = scalar_lea.sflag [#allocation4], %s336_s29 }
  0x1e   : > { %v376_v14 = vpack.c.bf16 %v1138_v10, %v1138_v10  ;;  %v938_v6 = vld [vmem:[%s1308_s7] sm:$0xff]   ;;  %s745_s15 = sshll.u32 %s337_s10, 4  ;;  %s953_s26 = scalar_lea.vmem %s952_s25, 32  ;;  %s1261_s15 = int_to_ptr.vmem [resolvable:$true] %s745_s15 }
  0x1f   : > { %vm395_vm3 = vcmp.eq.s32.totalorder %v1122_v3, %v1142_v11  ;;  %vm396_vm4 = vcmp.eq.s32.totalorder %v384_v7, %v1142_v11  ;;  %vm407_vm5 = vcmp.eq.s32.totalorder %v1122_v3, %v1144_v12  ;;  %vm408_vm6 = vcmp.eq.s32.totalorder %v384_v7, %v1144_v12  ;;  %351 = vperm.xlu0 %932, %v348_v35   ;;  %s947_s24 = scalar_lea.vmem %s1261_s15, 16  ;;  %p954_p0 = scmp.lt.s32.totalorder %s1261_s15, %s952_s25 }
  0x20   : > { %888 = vmatprep.subr.msk.bf16.mxu1 %vm550_vm2, %v376_v14  ;;  %vm415_vm7 = vmor %vm395_vm3, %vm407_vm5  ;;  %vm427_vm8 = vcmp.eq.s32.totalorder %v1122_v3, %v1146_v13  ;;  %vm428_vm9 = vcmp.eq.s32.totalorder %v384_v7, %v1146_v13  ;;  %vm397_vm12 = vcmp.eq.s32.totalorder %v385_v16, %v1142_v11  ;;  %vm409_vm13 = vcmp.eq.s32.totalorder %v385_v16, %v1144_v12  ;;  %p948_p11 = scmp.ne.s32.totalorder %s1261_s15, %s947_s24  ;;  %p955_p1 = scmp.lt.s32.totalorder %s953_s26, %s947_s24 }
  0x21   : > { %vm416_vm10 = vmor %vm396_vm4, %vm408_vm6  ;;  %vm398_vm15 = vcmp.eq.s32.totalorder %v386_v17, %v1142_v11  ;;  %vm410_vm3 = vcmp.eq.s32.totalorder %v386_v17, %v1144_v12  ;;  %v552_v24 = vsel %vm550_vm2, %v376_v14, 0  ;;  %vm429_vm5 = vcmp.eq.s32.totalorder %v385_v16, %v1146_v13  ;;  %364 = vperm.xlu1 %933, %v361_v36  }
  0x22   : > { %vm1169_vm11 = vmor %vm415_vm7, %vm427_vm8  ;;  %870 = vmatpush3.bf16.msra.mxu1 %v552_v24  ;;  %vm430_vm6 = vcmp.eq.s32.totalorder %v386_v17, %v1146_v13  ;;  %p949_p12 = pnand %p948_p11, %p1107_p5  ;;  %p956_p2 = por %p955_p1, %p954_p0 }
  0x23   : > { %vm1178_vm14 = vmor %vm416_vm10, %vm428_vm9  ;;  %vm399_vm9 = vcmp.eq.s32.totalorder %v387_v23, %v1142_v11  ;;  %vm411_vm10 = vcmp.eq.s32.totalorder %v387_v23, %v1144_v12  ;;  %875 = vmatprep.subr.bf16.mxu1 %v1013_v32 }
  0x24   : > { %vm828_vm4 = vmpackc.low %vm1178_vm14, %vm1169_vm11  ;;  %p950_p13 = pneg %p949_p12 }
  0x25   : > { %857 = vmatprep.subr.msk.bf16.mxu0 %vm828_vm4, %v1012_v28  ;;  %vm417_vm2 = vmor %vm397_vm12, %vm409_vm13  ;;  %872 = vmatmul.mubr.msk.bf16.vlgmr.msra.gmra.mrb[0].mxu1 %vm543_vm0, %v935_v25  ;;  %vm400_vm12 = vcmp.eq.s32.totalorder %v388_v27, %v1142_v11  ;;  %vm412_vm13 = vcmp.eq.s32.totalorder %v388_v27, %v1144_v12 }
  0x26   : > { %858 = vmatpush3.bf16.msk.msra.mxu0 %vm828_vm4, %v1012_v28  ;;  %vm418_vm7 = vmor %vm398_vm15, %vm410_vm3  ;;  %vm431_vm15 = vcmp.eq.s32.totalorder %v387_v23, %v1146_v13  ;;  %vm432_vm3 = vcmp.eq.s32.totalorder %v388_v27, %v1146_v13  ;;  %p957_p3 = pnand %p956_p2, %p950_p13 }
  0x27   : > { %vm1210_vm8 = vmor %vm417_vm2, %vm429_vm5  ;;  %vm401_vm2 = vcmp.eq.s32.totalorder %v389_v33, %v1142_v11 }
  0x28   : > { %vm438_vm11 = vmor %vm418_vm7, %vm430_vm6  ;;  %vm413_vm6 = vcmp.eq.s32.totalorder %v389_v33, %v1144_v12 }
  0x29   : > { %vm830_vm14 = vmpackc.low %vm438_vm11, %vm1210_vm8  ;;  %vm402_vm8 = vcmp.eq.s32.totalorder %v390_v34, %v1142_v11  ;;  %vm433_vm11 = vcmp.eq.s32.totalorder %v389_v33, %v1146_v13 }
  0x2a   : > { %859 = vmatprep.subr.msk.bf16.mxu0 %vm830_vm14, %v1012_v28  ;;  %vm419_vm0 = vmor %vm399_vm9, %vm411_vm10  ;;  %vm414_vm9 = vcmp.eq.s32.totalorder %v390_v34, %v1144_v12 }
  0x2b   : > { %860 = vmatpush3.bf16.msk.msra.mxu0 %vm830_vm14, %v1012_v28  ;;  %vm420_vm4 = vmor %vm400_vm12, %vm412_vm13  ;;  %vm434_vm12 = vcmp.eq.s32.totalorder %v390_v34, %v1146_v13 }
  0x2c   : > { %vm439_vm5 = vmor %vm419_vm0, %vm431_vm15  ;;  %vm480_vm0 = vcmask 1045504  }
  0x2d   : > { %vm440_vm7 = vmor %vm420_vm4, %vm432_vm3  ;;  %vm1320_vm3 = vcmask 490496   ;;  %vm1014_vm4 = vmmov 0  }
  0x2e   : > { %vm832_vm10 = vmpackc.low %vm440_vm7, %vm439_vm5  ;;  %879 = vmatprep.mubr.msk.bf16.mxu1 %vm1014_vm4, %v1013_v32 }
  0x2f   : > { %861 = vmatprep.subr.msk.bf16.mxu0 %vm832_vm10, %v1012_v28  ;;  %vm421_vm1 = vmor %vm401_vm2, %vm413_vm6 }
  0x30   : > { %862 = vmatpush3.bf16.msk.msra.mxu0 %vm832_vm10, %v1012_v28  ;;  %vm422_vm13 = vmor %vm402_vm8, %vm414_vm9 }
  0x31   : > { %vm441_vm14 = vmor %vm421_vm1, %vm433_vm11  ;;  %vm656_vm1 = vcmask 261120  }
  0x32   : > { %vm442_vm15 = vmor %vm422_vm13, %vm434_vm12  ;;  %v824_v37 = vsel %vm441_vm14, 1.0, %v1013_v32 }
  0x33   : > { %v825_v38 = vsel %vm442_vm15, 1.0, %v1013_v32 }
  0x34   : > { %v462_v39 = vpack.c.bf16 %v825_v38, %v824_v37 }
  0x36   : > { %887 = vmatprep.subr.msk.bf16.mxu0 %vm480_vm0, %v462_v39  ;;  %v482_v40 = vsel %vm480_vm0, %v462_v39, 0 }
  0x37   : > { %864 = vmatpush3.bf16.msra.mxu0 %v482_v40 }
  0x3a   : > { %866 = vmatmul.mubr.msk.bf16.vlgmr.msra.gmra.mrb[0].mxu0 %vm1320_vm3, %v937_v41 }
  0x92   : > { %v610_v47 = vpop.permute.xlu0 %609 }
  0x93   : > { %v620_v46 = vpop.permute.xlu1 %619 }
  0x96   : > { %v615_v59 = vpop.permute.xlu0 %614 }
  0x97   : > { %v625_v56 = vpop.permute.xlu1 %624 }
  0x9a   : > { %v644_v7 = vpop.permute.xlu0 %643 }
  0x9b   : > { %v649_v16 = vpop.permute.xlu1 %648 }
  0x9e   : > { %v352_v8 = vpop.permute.xlu0 %351 }
  0x9f   : > { %v354_v9 = vmul.f32 %v352_v8, %v1138_v10 }
  0xa0   : > { %v365_v28 = vpop.permute.xlu1 %364 }
  0xa1   : > { %v355_v11 = vrot.slane %v354_v9, 4  ;;  %v370_v30 = vrot.slane %v365_v28, %v369_v4 }
  0xa3   : > { %v356_v12 = vadd.f32 %v355_v11, %v354_v9 }
  0xa5   : > { %v357_v18 = vrot.slane %v356_v12, 2 }
  0xa7   : > { %v358_v23 = vadd.f32 %v357_v18, %v356_v12 }
  0xa9   : > { %v359_v26 = vrot.slane %v358_v23, 1 }
  0xab   : > { %v360_v10 = vadd.f32 %v359_v26, %v358_v23 }
  0xad   : > { %v371_v33 = vadd.f32 %v370_v30, %v360_v10 }
  0xf8   : > { %v873_v42 = vpop.f32.mrb[0].mxu1 }
  0xf9   : > { %v588_v43 = vpop.f32.mrb[1].mxu1 }
  0xfa   : > { %v874_v44 = vpop.f32.mrb[2].mxu1 }
  0xfb   : > { %v591_v45 = vpop.f32.mrb[3].mxu1 }
 0x10d   : > { %v867_v48 = vpop.f32.mrb[0].mxu0 }
 0x10e   : > { %v597_v49 = vadd.f32 %v873_v42, %v867_v48  ;;  %v518_v50 = vpop.f32.mrb[1].mxu0 }
 0x10f   : > { %v589_v51 = vadd.f32 %v588_v43, %v518_v50  ;;  %v868_v52 = vpop.f32.mrb[2].mxu0 }
 0x110   : > { %v629_v53 = vadd.f32 %v620_v46, %v597_v49  ;;  %v600_v54 = vadd.f32 %v874_v44, %v868_v52  ;;  %v521_v55 = vpop.f32.mrb[3].mxu0 }
 0x111   : > { %v627_v57 = vadd.f32 %v610_v47, %v589_v51  ;;  %v592_v58 = vadd.f32 %v591_v45, %v521_v55 }
 0x112   : > { %v630_v60 = vadd.f32 %v625_v56, %v600_v54  ;;  %v633_v62 = vmax.f32 %v629_v53, 0.0 }
 0x113   : > { %v628_v61 = vadd.f32 %v615_v59, %v592_v58  ;;  %v631_v0 = vmax.f32 %v627_v57, 0.0 }
 0x114   : > { %v634_v63 = vmax.f32 %v630_v60, 0.0 }
 0x115   : > { %v632_v1 = vmax.f32 %v628_v61, 0.0 }
 0x116   : > { %v640_v2 = vpack.c.bf16 %v634_v63, %v633_v62 }
 0x117   : > { %v639_v5 = vpack.c.bf16 %v632_v1, %v631_v0 }
 0x119   : > { %876 = vmatpush3.bf16.msra.mxu1 %v639_v5 }
 0x11a   : > { %877 = vmatprep.subr.bf16.mxu1 %v1013_v32 }
 0x11d   : > { %878 = vmatpush3.bf16.msra.mxu1 %v640_v2 }
 0x120   : > { %880 = vmatmul.mubr.msk.bf16.vlgmr.msra.gmra.mrb[4].mxu1 %vm656_vm1, %v938_v6 }
 0x1f3   : > { %v694_v13 = vpop.f32.mrb[4].mxu1 }
 0x1f4   : > { %v695_v14 = vadd.f32 %v694_v13, %v644_v7  ;;  %v881_v15 = vpop.f32.mrb[5].mxu1 }
 0x1f5   : > { %v697_v17 = vpop.f32.mrb[6].mxu1 }
 0x1f6   : > { %v698_v19 = vadd.f32 %v697_v17, %v649_v16  ;;  %v882_v20 = vpop.f32.mrb[7].mxu1  ;;  %v701_v21 = vmax.f32 %v695_v14, 0.0 }
 0x1f8   : > { %v702_v22 = vmax.f32 %v698_v19, 0.0 }
 0x1fa   : > { %v703_v24 = vmax.f32 %v701_v21, %v702_v22 }
 0x1fc   : > { %v704_v25 = vrot.slane %v703_v24, 4 }
 0x1fe   : > { %v705_v27 = vmax.f32 %v703_v24, %v704_v25 }
 0x200   : > { %v706_v29 = vrot.slane %v705_v27, 2 }
 0x202   : > { %v707_v31 = vmax.f32 %v705_v27, %v706_v29 }
 0x204   : > { %v708_v32 = vrot.slane %v707_v31, 1 }
 0x206   : > { %v709_v34 = vmax.f32 %v707_v31, %v708_v32 }
 0x208   : > { %v710_v35 = vmax.f32 %v709_v34, %v371_v33 }
 0x20a   : > { %v714_v36 = vsub.f32 %v701_v21, %v710_v35  ;;  %v715_v37 = vsub.f32 %v702_v22, %v710_v35  ;;  %v711_v40 = vsub.f32 %v371_v33, %v710_v35 }
 0x20c   : > { %v716_v38 = vmul.f32 1.442695, %v714_v36  ;;  %v718_v39 = vmul.f32 1.442695, %v715_v37  ;;  %v712_v43 = vmul.f32 1.442695, %v711_v40 }
 0x20e   : > { %939 = vpow2.f32 %v716_v38 }
 0x20f   : > { %941 = vpow2.f32 %v718_v39 }
 0x210   : > { %943 = vpow2.f32 %v712_v43 }
 0x218   : > { %v940_v41 = vpop.eup %939 }
 0x219   : > { %v942_v42 = vpop.eup %941 }
 0x21a   : > { %v720_v44 = vadd.f32 %v942_v42, %v940_v41  ;;  %v944_v49 = vpop.eup %943 }
 0x21c   : > { %v721_v3 = vrot.slane %v720_v44, 4 }
 0x21e   : > { %v722_v4 = vadd.f32 %v721_v3, %v720_v44 }
 0x220   : > { %v723_v45 = vrot.slane %v722_v4, 2 }
 0x222   : > { %v724_v46 = vadd.f32 %v723_v45, %v722_v4 }
 0x224   : > { %v725_v47 = vrot.slane %v724_v46, 1 }
 0x226   : > { %v726_v48 = vadd.f32 %v725_v47, %v724_v46 }
 0x228   : > { %v727_v50 = vadd.f32 %v944_v49, %v726_v48 }
 0x22a   : > { %945 = vlog2.f32 %v727_v50 }
 0x234   : > { %v946_v51 = vpop.eup %945 }
 0x235   : > { %v729_v52 = vmul.f32 0.6931472, %v946_v51 }
 0x237   : > { %v730_v53 = vadd.f32 %v729_v52, %v710_v35 }
 0x239   : > { %731 = vst [vmem:[%s337_s10] sm:$0x1] %v730_v53 }
 0x23a   : > { %960 = shalt.err (!%p957_p3)
}
 0x23b   : > { %s961_s27 = scalar_lea.hbm %s1259_s22, 16  ;;  %s965_s30 = scalar_lea.hbm %s1310_s9, 48 }
 0x23c   : > { %p962_p4 = scmp.ne.s32.totalorder %s1259_s22, %s961_s27  ;;  %p966_p9 = scmp.lt.u32.totalorder %s1259_s22, %s1310_s9 }
 0x23d   : > { %p967_p10 = scmp.lt.u32.totalorder %s965_s30, %s961_s27  ;;  %p969_p12 = scmp.lt.u32.totalorder %s961_s27, %s1259_s22 }
 0x23e   : > { %p963_p7 = pnand %p962_p4, %p1107_p5 }
 0x23f   : > { %p968_p11 = por %p967_p10, %p966_p9 }
 0x240   : > { %p964_p8 = pneg %p963_p7 }
 0x241   : > { %p970_p13 = por %p969_p12, %p968_p11 }
 0x243   : > { %p971_p0 = pnand %p970_p13, %p964_p8 }
 0x245   : > { %974 = shalt.err (!%p971_p0)
}
 0x246   : > { %889 = dma.vmem_to_hbm [thread:$0]  (%p1107_p5), %s1261_s15, 16, %s1259_s22, %s733_s23  }
 0x247 PF: > { %p895_p1 = scmp.ge.s32.totalorder %s1009_s14, 2  ;;  %s757_s18 = sand.u32 1, %s997_s11  }
 0x248   : > { %s758_s24 = scalar_lea.sflag [#allocation4], %s757_s18 }
 0x249   : > { %p892_p2 = pnand %p895_p1, %p1111_p6 }
 0x24b   : > { %992 = dma.done.wait (!%p892_p2), %s758_s24, 16  }
 0x24c   : > { %994 = vsyncadd (!%p892_p2), %s758_s24, 4294967280  ;;  %p21_p3 = scmp.ge.s32.totalorder %s1094_s16, 5   ;;  %s1321_s11 = smov %s1001_s12 }
 0x24d   : > { %s1322_s12 = smov %s1005_s13  ;;  %s1323_s13 = smov %s1105_s19 }
 0x24e   : > { %s1324_s14 = smov %s1094_s16  ;;  %23 = sbr.rel (!%p21_p3) target bundleno = 6 (0x6), region = 94 }
 0x255   :  { %762 = vsyncpa [#allocation4], 1 }
 0x256   :  { %764 = vsyncpa [#allocation4 + $0x1], 1 }

</bundles_post_ra>
